<compile_context>
chip_gen: v7x
topology: tpu7x:2x2x1
jax: 0.10.0
libtpu: 0.0.40
codegen_flags: <defaults>
</compile_context>

<pallas_src>
import random

import numpy as np
import jax
import jax.numpy as jnp
from jax.experimental import pallas as pl
from jax.experimental.pallas import tpu as pltpu


# ----------------------------------------------------------------------------
# Host-side helpers
# ----------------------------------------------------------------------------
def _bilinear_weight_matrix(out_size: int, in_size: int) -> np.ndarray:
    """(out_size, in_size) bilinear interpolation matrix, align_corners=False."""
    scale = in_size / out_size
    dst = np.arange(out_size, dtype=np.float64)
    src = np.clip((dst + 0.5) * scale - 0.5, 0.0, in_size - 1)
    lo = np.floor(src).astype(np.int64)
    hi = np.minimum(lo + 1, in_size - 1)
    frac = src - lo
    w = np.zeros((out_size, in_size), dtype=np.float64)
    w[np.arange(out_size), lo] += 1.0 - frac
    w[np.arange(out_size), hi] += frac
    return w


def _get_params(rng: random.Random, crop_size, ori_w: int, ori_h: int):
    """Mirror of RandomCrop.get_params (host-side Python RNG)."""
    while True:
        h_top, h_bot = rng.randint(0, crop_size[0]), rng.randint(0, crop_size[0])
        w_left, w_right = rng.randint(0, crop_size[1]), rng.randint(0, crop_size[1])
        h = ori_h - h_top - h_bot
        w = ori_w - w_left - w_right
        if h < ori_h * 0.5 or w < ori_w * 0.5:
            continue
        return h_top, w_left, h, w


def _crop_embedded_kron_weight(H, W, i, j, h, w, dtype):
    """Fused (H*W, H*W) weight = kron(Wh_full, Ww_full), returned transposed."""
    wh_full = np.zeros((H, H), dtype=np.float64)
    wh_full[:, i:i + h] = _bilinear_weight_matrix(H, h)      # vertical, crop in cols
    ww_full = np.zeros((W, W), dtype=np.float64)
    ww_full[:, j:j + w] = _bilinear_weight_matrix(W, w)      # horizontal, crop in cols
    wfull_t = np.kron(wh_full, ww_full).T.copy()              # (H*W, H*W) == Wfull^T
    return jnp.asarray(wfull_t, dtype=dtype)


# ----------------------------------------------------------------------------
# Pallas kernel: one lane-dense matmul against the fused Kronecker weight
# ----------------------------------------------------------------------------
def _fused_crop_resize_kernel(x_ref, wt_ref, o_ref):
    # x_ref:  (Bb, C, H*W)   lane-dense input slab for this grid step
    # wt_ref: (H*W, H*W)     Wfull^T (resident across grid steps, constant map)
    # o_ref:  (Bb, C, H*W)   lane-dense output slab
    Bb, C, HW = x_ref.shape

    # Merge leading dims (layout-preserving) and cast operands to the MXU dtype.
    x = x_ref[...].reshape(Bb * C, HW).astype(wt_ref.dtype)

    # Single (Bb*C, HW) @ (HW, HW) matmul with f32 accumulation.
    out = jnp.dot(x, wt_ref[...], preferred_element_type=jnp.float32)

    if jnp.issubdtype(o_ref.dtype, jnp.integer):
        # Epilogue on the f32 accumulator (no extra bf16 elementwise work).
        # NOTE: jnp.round is round-half-to-even, same as torch's float->int cast path.
        info = jnp.iinfo(o_ref.dtype)
        out = jnp.clip(jnp.round(out), info.min, info.max)

    o_ref[...] = out.reshape(Bb, C, HW).astype(o_ref.dtype)


@jax.jit
def _resized_crop(img3, wt):
    """img3: (B, C, H*W); wt: (H*W, H*W) = Wfull^T.  Returns (B, C, H*W)."""
    B, C, HW = img3.shape

    # One "parallel" grid axis of size 2 when possible: fills both v7x
    # TensorCores; on v5e/v6e it is just one extra (cheap) serial grid step.
    G = 2 if (B >= 2 and B % 2 == 0) else 1
    Bb = B // G

    flops = 2 * B * C * HW * HW
    bytes_accessed = (2 * img3.size * img3.dtype.itemsize
                      + wt.size * wt.dtype.itemsize)

    return pl.pallas_call(
        _fused_crop_resize_kernel,
        out_shape=jax.ShapeDtypeStruct((B, C, HW), img3.dtype),
        grid=(G,),
        in_specs=[
            pl.BlockSpec((Bb, C, HW), lambda g: (g, 0, 0)),
            pl.BlockSpec((HW, HW), lambda g: (0, 0)),   # weight stays resident
        ],
        out_specs=pl.BlockSpec((Bb, C, HW), lambda g: (g, 0, 0)),
        compiler_params=pltpu.CompilerParams(
            dimension_semantics=("parallel",)),
        cost_estimate=pl.CostEstimate(
            flops=flops, transcendentals=0, bytes_accessed=bytes_accessed),
    )(img3, wt)


# ----------------------------------------------------------------------------
# Public forward (mirrors RandomCrop.forward)
# ----------------------------------------------------------------------------
def random_crop(img: jax.Array, crop_size=(4, 4), seed: int = 0) -> jax.Array:
    """Random crop then bilinear resize back to the original (H, W)."""
    B, C, H, W = img.shape
    rng = random.Random(seed)
    # get_params(ori_w, ori_h) ordering as in the original module.
    i, j, h, w = _get_params(rng, crop_size, W, H)

    # bf16 MXU operands for floating images (f32 accumulation); f32 operands
    # for integer images so uint8 results stay at torchvision parity.
    if jnp.issubdtype(img.dtype, jnp.floating):
        compute_dtype = jnp.bfloat16
    else:
        compute_dtype = jnp.float32

    wt = _crop_embedded_kron_weight(H, W, i, j, h, w, compute_dtype)
    out3 = _resized_crop(img.reshape(B, C, H * W), wt)   # free reshapes
    return out3.reshape(B, C, H, W)


if __name__ == "__main__":
    B, C, H, W = 2, 4, 16, 16
    key = jax.random.PRNGKey(0)
    img = jax.random.uniform(key, (B, C, H, W), dtype=jnp.float32)

    out = random_crop(img, crop_size=(4, 4), seed=0)
    jax.block_until_ready(out)

    assert out.shape == (B, C, H, W)
    assert out.dtype == img.dtype

    # Reference check against the direct crop-then-resize formulation (f32).
    rng = random.Random(0)
    i, j, h, w = _get_params(rng, (4, 4), W, H)
    Wh = jnp.asarray(_bilinear_weight_matrix(H, h), dtype=jnp.float32)
    Ww = jnp.asarray(_bilinear_weight_matrix(W, w), dtype=jnp.float32)
    crop = img[:, :, i:i + h, j:j + w]
    ref = jnp.einsum('oh,bchw,pw->bcop', Wh, crop, Ww)
    err = float(jnp.max(jnp.abs(out - ref)))
    # bf16 MXU operands: expect ~1e-2 agreement (not 1e-4).
    assert err < 2e-2, f"max abs err {err}"

    print("KERNEL_OK")
</pallas_src>

<mosaic_0001>
module attributes {stable_mosaic.version = 11 : i64} {
  func.func @_fused_crop_resize_kernel(%arg0: i32, %arg1: memref<1x4x256xf32, #tpu.memory_space<vmem>>, %arg2: memref<256x256xbf16, #tpu.memory_space<vmem>>, %arg3: memref<1x4x256xf32, #tpu.memory_space<vmem>>) attributes {dimension_semantics = [#tpu.dimension_semantics<parallel>], iteration_bounds = array<i64: 2>, scalar_prefetch = 0 : i64, scratch_operands = 0 : i64, tpu.core_type = #tpu.core_type<tc>, window_params = [{transform_indices = @transform_0, window_bounds = array<i64: 1, 4, 256>}, {pipeline_mode = #tpu.pipeline_mode<synchronous>, transform_indices = @transform_1, window_bounds = array<i64: 256, 256>}, {transform_indices = @transform_2, window_bounds = array<i64: 1, 4, 256>}]} {
    %c0 = arith.constant 0 : index
    %c0_0 = arith.constant 0 : index
    %c0_1 = arith.constant 0 : index
    %0 = vector.load %arg1[%c0, %c0_0, %c0_1] : memref<1x4x256xf32, #tpu.memory_space<vmem>>, vector<1x4x256xf32>
    %1 = vector.shape_cast %0 : vector<1x4x256xf32> to vector<4x256xf32>
    %2 = arith.truncf %1 : vector<4x256xf32> to vector<4x256xbf16>
    %c0_2 = arith.constant 0 : index
    %c0_3 = arith.constant 0 : index
    %3 = vector.load %arg2[%c0_2, %c0_3] : memref<256x256xbf16, #tpu.memory_space<vmem>>, vector<256x256xbf16>
    %cst = arith.constant dense<0.000000e+00> : vector<4x256xf32>
    %4 = tpu.matmul %2, %3, %cst {dimension_numbers = #tpu.dot_dimension_numbers<[1], [0], [0], [1], [0, 0, 1, 1], [], []>} : vector<4x256xbf16>, vector<256x256xbf16>, vector<4x256xf32> -> vector<4x256xf32>
    %5 = vector.shape_cast %4 : vector<4x256xf32> to vector<1x4x256xf32>
    %c0_4 = arith.constant 0 : index
    %c0_5 = arith.constant 0 : index
    %c0_6 = arith.constant 0 : index
    %6 = vector.load %arg3[%c0_4, %c0_5, %c0_6] : memref<1x4x256xf32, #tpu.memory_space<vmem>>, vector<1x4x256xf32>
    tpu.vector_store %arg3[%c0_4, %c0_5, %c0_6], %5 {strides = array<i32>} : memref<1x4x256xf32, #tpu.memory_space<vmem>>, vector<1x4x256xf32>,
    return
  }
  func.func @transform_0(%arg0: i32) -> (i32, i32, i32) {
    %c0_i32 = arith.constant 0 : i32
    %c0_i32_0 = arith.constant 0 : i32
    %c0_i32_1 = arith.constant 0 : i32
    return %arg0, %c0_i32, %c0_i32_0 : i32, i32, i32
  }
  func.func @transform_1(%arg0: i32) -> (i32, i32) {
    %c0_i32 = arith.constant 0 : i32
    %c0_i32_0 = arith.constant 0 : i32
    %c0_i32_1 = arith.constant 0 : i32
    return %c0_i32, %c0_i32_0 : i32, i32
  }
  func.func @transform_2(%arg0: i32) -> (i32, i32, i32) {
    %c0_i32 = arith.constant 0 : i32
    %c0_i32_0 = arith.constant 0 : i32
    %c0_i32_1 = arith.constant 0 : i32
    return %arg0, %c0_i32, %c0_i32_0 : i32, i32, i32
  }
}

</mosaic_0001>

<bundles_post_ra>
// kernel: _resized_crop.1
= control target key start
LH: loop header
LB: loop body
LE: loop exit
PB: predicated region body
PF: predicated region fallthrough
CT: control target
= control target key end

     0   :  { %7 = vsyncpa [#allocation3], 0  ;;  %s1022_s0 = inlined_call_operand.hbm [shape: f32[2,4,256], index: 0, kind: input, shape index: {}]   ;;  %s1023_s1 = inlined_call_operand.hbm [shape: bf16[256,256], index: 1, kind: input, shape index: {}]   ;;  %s1024_s2 = inlined_call_operand.hbm [shape: f32[2,4,256], index: 2, kind: output, shape index: {}]  }
   0x1   :  { %9 = vsyncpa [#allocation3 + $0x1], 0 }
   0x2   :  { %10 = vsyncpa [#allocation6], 0 }
   0x3   :  { %11 = vsyncpa [#allocation4], 0 }
   0x4   :  { %13 = vsyncpa [#allocation4 + $0x1], 0  ;;  %s822_s9 = smov 0   ;;  %s824_s10 = smov 0  }
   0x5   :  { %s826_s11 = smov 0   ;;  %s828_s12 = smov 0  }
   0x6 LB: > { %s843_s13 = sadd.s32 4294967295, %s800_s12   ;;  %s514_s14 = sadd.s32 4294967294, %s800_s12   ;;  %s800_s12 = sphi %s828_s12, %s1044_s12   ;;  %s796_s11 = sphi %s826_s11, %s1043_s11   ;;  %s792_s10 = sphi %s824_s10, %s1042_s10   ;;  %s788_s9 = sphi %s822_s9, %s1041_s9  }
   0x7   : > { %p39_p0 = scmp.ne.s32.totalorder %s792_s10, %s788_s9  ;;  %p1025_p1 = scmp.eq.s32.totalorder %s843_s13, 0 }
   0x8   : > { %p90_p3 = scmp.eq.s32.totalorder %s514_s14, 1  ;;  %p515_p5 = scmp.ge.s32.totalorder %s800_s12, 1 }
   0x9   : > { %p852_p4 = por %p1025_p1, %p39_p0  ;;  %p97_p7 = scmp.lt.s32.totalorder %s800_s12, 3 }
   0xa   : > { %p857_p6 = por %p90_p3, %p39_p0  ;;  %s802_s18 = smov [#allocation5]  }
   0xb   : > { %s1028_s15 = scalar_select %p852_p4, 1, 0 }
   0xc   : > { %s1029_s16 = scalar_select %p857_p6, 1, 0 }
   0xd   : > { %p862_p8 = pnand %p515_p5, %p97_p7  ;;  %s109_s19 = sshll.u32 %s802_s18, 4  ;;  %s866_s19 = int_to_ptr.vmem [resolvable:$true] %s109_s19 }
   0xe   : > { %s878_s21 = sadd.s32 1, %s800_s12   ;;  %s26_s22 = sadd.s32 1, %s796_s11 }
   0xf   : > { %s1030_s17 = scalar_select %p862_p8, 1, 0 }
  0x10   : > { %p572_p9 = pneg %p862_p8  ;;  %s23_s23 = ssub.s32 %s800_s12, %s878_s21 }
  0x11   : > { %s672_s26 = scalar_lea.hbm %s1023_s1, 4096 }
  0x12   : > { %p873_p11 = pnand %p572_p9, %p1025_p1  ;;  %p673_p12 = scmp.ne.s32.totalorder %s1023_s1, %s672_s26 }
  0x13   : > { %p679_p5 = scmp.lt.u32.totalorder %s672_s26, %s1023_s1 }
  0x14   : > { %p674_p13 = pneg %p873_p11 }
  0x16   : > { %p675_p0 = pnand %p674_p13, %p673_p12 }
  0x18   : > { %p676_p3 = pneg %p675_p0 }
  0x1a   : > { %p681_p7 = pnand %p679_p5, %p676_p3 }
  0x1c   : > { %684 = shalt.err (!%p681_p7)
}
  0x1d   : > { %s685_s3 = scalar_lea.vmem %s866_s19, 4096  ;;  %p693_p2 = scmp.lt.s32.totalorder %s866_s19, %s866_s19 }
  0x1e   : > { %p686_p9 = scmp.ne.s32.totalorder %s866_s19, %s685_s3  ;;  %p694_p6 = scmp.lt.s32.totalorder %s685_s3, %s685_s3 }
  0x20   : > { %p688_p10 = pnand %p686_p9, %p674_p13  ;;  %p695_p4 = por %p694_p6, %p693_p2 }
  0x22   : > { %p689_p1 = pneg %p688_p10 }
  0x24   : > { %p696_p8 = pnand %p695_p4, %p689_p1 }
  0x26   : > { %699 = shalt.err (!%p696_p8)
}
  0x27   : > { %s803_s4 = smov 128   ;;  %s804_s5 = smov 8  }
  0x28   : > { %575 = dma.hbm_to_vmem [thread:$0]  (!%p873_p11), %s1023_s1, 4096, %s866_s19, [#allocation6], %s803_s4, %s803_s4, %s804_s5  }
  0x29   : > { %p24_p2 = scmp.eq.s32.totalorder %s23_s23, 0  ;;  %p33_p1 = scmp.ne.s32.totalorder %s796_s11, %s792_s10 }
  0x2a   : > { %p34_p4 = scmp.eq.s32.totalorder %s800_s12, 0  ;;  %p585_p6 = scmp.lt.s32.totalorder %s800_s12, 2 }
  0x2b   : > { %s909_s8 = scalar_select %p24_p2, %s796_s11, %s26_s22  }
  0x2c   : > { %p35_p8 = por %p34_p4, %p33_p1  ;;  %p1032_p10 = scmp.eq.s32.totalorder %s843_s13, 1 }
  0x2d   : > { %s123_s18 = sand.u32 1, %s796_s11   ;;  %s562_s24 = sshll.u32 %s800_s12, 7 }
  0x2e   : > { %p913_p12 = por %p1032_p10, %p33_p1  ;;  %s518_s25 = sshll.u32 %s123_s18, 3 }
  0x2f   : > { %s922_s27 = scalar_lea.hbm %s1022_s0, %s562_s24  ;;  %s127_s19 = scalar_lea.vmem [#allocation2], %s518_s25 }
  0x30   : > { %s135_s22 = sshll.u32 %s127_s19, 4  ;;  %p924_p11 = pnand %p585_p6, %p35_p8  ;;  %s928_s22 = int_to_ptr.vmem [resolvable:$true] %s135_s22 }
  0x31   : > { %s124_s28 = scalar_lea.sflag [#allocation3], %s123_s18  ;;  %s700_s29 = scalar_lea.hbm %s922_s27, 128 }
  0x32   : > { %p701_p13 = scmp.ne.s32.totalorder %s922_s27, %s700_s29  ;;  %p702_p0 = pneg %p924_p11 }
  0x33   : > { %s705_s4 = scalar_lea.hbm %s1022_s0, 256  ;;  %p706_p7 = scmp.lt.u32.totalorder %s922_s27, %s1022_s0 }
  0x34   : > { %p703_p3 = pnand %p702_p0, %p701_p13  ;;  %p707_p9 = scmp.lt.u32.totalorder %s705_s4, %s700_s29 }
  0x35   : > { %p709_p1 = scmp.lt.u32.totalorder %s700_s29, %s922_s27 }
  0x36   : > { %p704_p5 = pneg %p703_p3  ;;  %p708_p2 = por %p707_p9, %p706_p7 }
  0x38   : > { %p710_p4 = por %p709_p1, %p708_p2 }
  0x3a   : > { %p711_p6 = pnand %p710_p4, %p704_p5 }
  0x3c   : > { %714 = shalt.err (!%p711_p6)
}
  0x3d   : > { %s715_s7 = scalar_lea.vmem %s928_s22, 128  ;;  %s805_s18 = smov [#allocation2]  }
  0x3e   : > { %p716_p8 = scmp.ne.s32.totalorder %s928_s22, %s715_s7  ;;  %s720_s24 = sshll.u32 %s805_s18, 4  ;;  %s721_s24 = int_to_ptr.vmem [resolvable:$false] %s720_s24 }
  0x3f   : > { %s722_s25 = scalar_lea.vmem %s721_s24, 256  ;;  %p723_p3 = scmp.lt.s32.totalorder %s928_s22, %s721_s24 }
  0x40   : > { %p718_p10 = pnand %p716_p8, %p702_p0  ;;  %p724_p7 = scmp.lt.s32.totalorder %s722_s25, %s715_s7 }
  0x42   : > { %p719_p13 = pneg %p718_p10  ;;  %p725_p9 = por %p724_p7, %p723_p3 }
  0x44   : > { %p726_p2 = pnand %p725_p9, %p719_p13 }
  0x46   : > { %729 = shalt.err (!%p726_p2)
}
  0x47   : > { %579 = dma.hbm_to_vmem [thread:$0]  (!%p924_p11), %s922_s27, 128, %s928_s22, %s124_s28  }
  0x48   : > { %p1035_p5 = scmp.ne.s32.totalorder %s1030_s17, 0 }
  0x49   : > { %s958_s20 = sand.u32 (!%p1035_p5), 1, %s792_s10   ;;  %p1036_p0 = scmp.ne.s32.totalorder (!%p1035_p5), %s1028_s15, 0 }
  0x4a   : > { %144 = sbr.rel (%p1035_p5) target bundleno = 379 (0x17b), region = 28  ;;  %s522_s26 = sshll.u32 (!%p1035_p5), %s958_s20, 3 }
  0x4b   : > { %s147_s19 = scalar_lea.sflag (!%p1035_p5), [#allocation3], %s958_s20  ;;  %s150_s29 = scalar_lea.vmem (!%p1035_p5), [#allocation2], %s522_s26 }
  0x51   : > { %775 = dma.done.wait (%p1036_p0), %s147_s19, 128  }
  0x52   : > { %777 = vsyncadd (%p1036_p0), %s147_s19, 4294967168  ;;  %p1037_p11 = scmp.eq.s32.totalorder %s843_s13, 0 }
  0x54   : > { %779 = dma.done.wait (%p1037_p11), [#allocation6], 4096   ;;  %p1038_p1 = pmov %p1037_p11 }
  0x55   : > { %v623_v0 = vld [vmem:[#allocation5 + $0x4] ss:$8 sps:$4 sm:$0xff]   ;;  %v625_v1 = vld [vmem:[#allocation5] ss:$8 sps:$4 sm:$0xff]   ;;  %v626_v2 = vld [vmem:[#allocation5 + $0x14] ss:$8 sps:$4 sm:$0xff]  }
  0x56   : > { %781 = vsyncadd (%p1038_p1), [#allocation6], 4294963200  ;;  %373 = vmatprep.subr.bf16.mxu0 %v623_v0  ;;  %v628_v3 = vld [vmem:[#allocation5 + $0x10] ss:$8 sps:$4 sm:$0xff]   ;;  %v629_v4 = vld [vmem:[#allocation5 + $0x24] ss:$8 sps:$4 sm:$0xff]  }
  0x57   : > { %374 = vmatpush1.bf16.msra.mxu0 %v625_v1  ;;  %v631_v5 = vld [vmem:[#allocation5 + $0x20] ss:$8 sps:$4 sm:$0xff]   ;;  %v632_v6 = vld [vmem:[#allocation5 + $0x34] ss:$8 sps:$4 sm:$0xff]   ;;  %v634_v7 = vld [vmem:[#allocation5 + $0x30] ss:$8 sps:$4 sm:$0xff]  }
  0x58   : > { %375 = vmatprep.subr.bf16.mxu0 %v626_v2  ;;  %v635_v8 = vld [vmem:[#allocation5 + $0x44] ss:$8 sps:$4 sm:$0xff]   ;;  %v637_v9 = vld [vmem:[#allocation5 + $0x40] ss:$8 sps:$4 sm:$0xff]   ;;  %v638_v10 = vld [vmem:[#allocation5 + $0x54] ss:$8 sps:$4 sm:$0xff]  }
  0x59   : > { %v640_v11 = vld [vmem:[#allocation5 + $0x50] ss:$8 sps:$4 sm:$0xff]   ;;  %v641_v12 = vld [vmem:[#allocation5 + $0x64] ss:$8 sps:$4 sm:$0xff]   ;;  %v643_v15 = vld [vmem:[#allocation5 + $0x60] ss:$8 sps:$4 sm:$0xff]  }
  0x5a   : > { %v175_v13 = vld [vmem:[%s150_s29] sm:$0xff]  ;;  %v647_v19 = vld [vmem:[#allocation5 + $0x84] ss:$8 sps:$4 sm:$0xff]   ;;  %v649_v20 = vld [vmem:[#allocation5 + $0x80] ss:$8 sps:$4 sm:$0xff]   ;;  %s563_s15 = sshll.u32 %s843_s13, 7 }
  0x5b   : > { %376 = vmatpush1.bf16.msra.mxu0 %v628_v3  ;;  %v177_v14 = vcombine.high %v175_v13, %v175_v13  ;;  %v644_v16 = vld [vmem:[#allocation5 + $0x74] ss:$8 sps:$4 sm:$0xff]   ;;  %v646_v18 = vld [vmem:[#allocation5 + $0x70] ss:$8 sps:$4 sm:$0xff]   ;;  %v653_v23 = vld [vmem:[#allocation5 + $0xa4] ss:$8 sps:$4 sm:$0xff]   ;;  %v179_v35 = vpack.c.bf16 %v175_v13, %v175_v13  ;;  %s978_s28 = scalar_lea.hbm %s1024_s2, %s563_s15 }
  0x5c   : > { %377 = vmatprep.subr.bf16.mxu0 %v629_v4  ;;  %v650_v21 = vld [vmem:[#allocation5 + $0x94] ss:$8 sps:$4 sm:$0xff]   ;;  %v652_v22 = vld [vmem:[#allocation5 + $0x90] ss:$8 sps:$4 sm:$0xff]   ;;  %v655_v24 = vld [vmem:[#allocation5 + $0xa0] ss:$8 sps:$4 sm:$0xff]  }
  0x5d   : > { %v180_v17 = vpack.c.bf16 %v177_v14, %v177_v14  ;;  %v656_v25 = vld [vmem:[#allocation5 + $0xb4] ss:$8 sps:$4 sm:$0xff]   ;;  %v658_v26 = vld [vmem:[#allocation5 + $0xb0] ss:$8 sps:$4 sm:$0xff]   ;;  %v659_v27 = vld [vmem:[#allocation5 + $0xc4] ss:$8 sps:$4 sm:$0xff]  }
  0x5e   : > { %v661_v28 = vld [vmem:[#allocation5 + $0xc0] ss:$8 sps:$4 sm:$0xff]   ;;  %v662_v29 = vld [vmem:[#allocation5 + $0xd4] ss:$8 sps:$4 sm:$0xff]   ;;  %v664_v30 = vld [vmem:[#allocation5 + $0xd0] ss:$8 sps:$4 sm:$0xff]  }
  0x5f   : > { %378 = vmatpush1.bf16.msra.mxu0 %v631_v5  ;;  %405 = vmatprep.mubr.bf16.mxu0 %v180_v17  ;;  %v665_v31 = vld [vmem:[#allocation5 + $0xe4] ss:$8 sps:$4 sm:$0xff]   ;;  %v667_v32 = vld [vmem:[#allocation5 + $0xe0] ss:$8 sps:$4 sm:$0xff]   ;;  %v668_v33 = vld [vmem:[#allocation5 + $0xf4] ss:$8 sps:$4 sm:$0xff]  }
  0x60   : > { %379 = vmatprep.subr.bf16.mxu0 %v632_v6  ;;  %v670_v34 = vld [vmem:[#allocation5 + $0xf0] ss:$8 sps:$4 sm:$0xff]   ;;  %s174_s17 = scalar_lea.vmem [#allocation7], %s522_s26  ;;  %s420_s13 = scalar_lea.sflag [#allocation4], %s958_s20 }
  0x61   : > { %s434_s27 = sshll.u32 %s174_s17, 4  ;;  %s806_s3 = smov [#allocation7]   ;;  %s980_s27 = int_to_ptr.vmem [resolvable:$true] %s434_s27 }
  0x62   : > { %s730_s30 = scalar_lea.vmem %s980_s27, 128  ;;  %s734_s4 = sshll.u32 %s806_s3, 4  ;;  %s735_s4 = int_to_ptr.vmem [resolvable:$false] %s734_s4 }
  0x63   : > { %380 = vmatpush1.bf16.msra.mxu0 %v634_v7  ;;  %p731_p4 = scmp.ne.s32.totalorder %s980_s27, %s730_s30  ;;  %s736_s5 = scalar_lea.vmem %s735_s4, 256 }
  0x64   : > { %381 = vmatprep.subr.bf16.mxu0 %v635_v8  ;;  %p737_p10 = scmp.lt.s32.totalorder %s980_s27, %s735_s4  ;;  %p738_p13 = scmp.lt.s32.totalorder %s736_s5, %s730_s30 }
  0x65   : > { %p732_p6 = pnand %p731_p4, %p913_p12 }
  0x66   : > { %p739_p3 = por %p738_p13, %p737_p10 }
  0x67   : > { %382 = vmatpush1.bf16.msra.mxu0 %v637_v9  ;;  %p733_p8 = pneg %p732_p6 }
  0x68   : > { %383 = vmatprep.subr.bf16.mxu0 %v638_v10 }
  0x69   : > { %p740_p7 = pnand %p739_p3, %p733_p8 }
  0x6b   : > { %384 = vmatpush1.bf16.msra.mxu0 %v640_v11 }
  0x6c   : > { %385 = vmatprep.subr.bf16.mxu0 %v641_v12 }
  0x6f   : > { %386 = vmatpush1.bf16.msra.mxu0 %v643_v15 }
  0x70   : > { %387 = vmatprep.subr.bf16.mxu0 %v644_v16 }
  0x73   : > { %388 = vmatpush1.bf16.msra.mxu0 %v646_v18 }
  0x74   : > { %389 = vmatprep.subr.bf16.mxu0 %v647_v19 }
  0x77   : > { %390 = vmatpush1.bf16.msra.mxu0 %v649_v20 }
  0x78   : > { %391 = vmatprep.subr.bf16.mxu0 %v650_v21 }
  0x7b   : > { %392 = vmatpush1.bf16.msra.mxu0 %v652_v22 }
  0x7c   : > { %393 = vmatprep.subr.bf16.mxu0 %v653_v23 }
  0x7f   : > { %394 = vmatpush1.bf16.msra.mxu0 %v655_v24 }
  0x80   : > { %395 = vmatprep.subr.bf16.mxu0 %v656_v25 }
  0x83   : > { %396 = vmatpush1.bf16.msra.mxu0 %v658_v26 }
  0x84   : > { %397 = vmatprep.subr.bf16.mxu0 %v659_v27 }
  0x87   : > { %398 = vmatpush1.bf16.msra.mxu0 %v661_v28 }
  0x88   : > { %399 = vmatprep.subr.bf16.mxu0 %v662_v29 }
  0x8b   : > { %400 = vmatpush1.bf16.msra.mxu0 %v664_v30 }
  0x8c   : > { %401 = vmatprep.subr.bf16.mxu0 %v665_v31 }
  0x8f   : > { %402 = vmatpush1.bf16.msra.mxu0 %v667_v32 }
  0x90   : > { %403 = vmatprep.subr.bf16.mxu0 %v668_v33 }
  0x93   : > { %404 = vmatpush1.bf16.msra.mxu0 %v670_v34 }
  0x96   : > { %406 = vmatmul.mubr.bf16.vlgmr.msra.gmra.mrb[0].mxu0 %v179_v35 }
 0x169   : > { %v407_v36 = vpop.f32.mrb[0].mxu0 }
 0x16a   : > { %v409_v37 = vpop.f32.mrb[1].mxu0 }
 0x16b   : > { %v416_v38 = vcombine.low %v407_v36, %v409_v37  ;;  %v411_v39 = vpop.f32.mrb[2].mxu0 }
 0x16c   : > { %v412_v40 = vpop.f32.mrb[3].mxu0 }
 0x16d   : > { %418 = vst [vmem:[%s174_s17] sm:$0xff] %v416_v38 }
 0x16e   : > { %743 = shalt.err (!%p740_p7)
}
 0x16f   : > { %s744_s6 = scalar_lea.hbm %s978_s28, 128  ;;  %s748_s24 = scalar_lea.hbm %s1024_s2, 256 }
 0x170   : > { %p745_p9 = scmp.ne.s32.totalorder %s978_s28, %s744_s6  ;;  %p749_p0 = scmp.lt.u32.totalorder %s978_s28, %s1024_s2 }
 0x171   : > { %p750_p11 = scmp.lt.u32.totalorder %s748_s24, %s744_s6  ;;  %p752_p4 = scmp.lt.u32.totalorder %s744_s6, %s978_s28 }
 0x172   : > { %p746_p2 = pnand %p745_p9, %p913_p12 }
 0x173   : > { %p751_p1 = por %p750_p11, %p749_p0 }
 0x174   : > { %p747_p5 = pneg %p746_p2 }
 0x175   : > { %p753_p6 = por %p752_p4, %p751_p1 }
 0x177   : > { %p754_p8 = pnand %p753_p6, %p747_p5 }
 0x179   : > { %757 = shalt.err (!%p754_p8)
}
 0x17a   : > { %570 = dma.vmem_to_hbm [thread:$0]  (%p913_p12), %s980_s27, 128, %s978_s28, %s420_s13  }
 0x17b PF: > { %s446_s26 = sand.u32 1, %s788_s9   ;;  %p1039_p10 = scmp.ne.s32.totalorder %s1029_s16, 0 }
 0x17c   : > { %p1040_p13 = scmp.ge.s32.totalorder %s800_s12, 2  ;;  %s447_s19 = scalar_lea.sflag [#allocation4], %s446_s26 }
 0x17e   : > { %p581_p3 = pnand %p1040_p13, %p1039_p10 }
 0x180   : > { %783 = dma.done.wait (!%p581_p3), %s447_s19, 128  }
 0x181   : > { %785 = vsyncadd (!%p581_p3), %s447_s19, 4294967168  ;;  %p16_p7 = scmp.ge.s32.totalorder %s878_s21, 4   ;;  %s1041_s9 = smov %s792_s10 }
 0x182   : > { %s1042_s10 = smov %s796_s11  ;;  %s1043_s11 = smov %s909_s8 }
 0x183   : > { %s1044_s12 = smov %s878_s21  ;;  %18 = sbr.rel (!%p16_p7) target bundleno = 6 (0x6), region = 77 }
 0x18a   :  { %452 = vsyncpa [#allocation3], 1 }
 0x18b   :  { %454 = vsyncpa [#allocation3 + $0x1], 1 }
 0x18c   :  { %455 = vsyncpa [#allocation6], 1 }
 0x18d   :  { %456 = vsyncpa [#allocation4], 1 }
 0x18e   :  { %458 = vsyncpa [#allocation4 + $0x1], 1 }

</bundles_post_ra>
